<compile_context>
chip_gen: v6e
topology: v6e:2x2x1
jax: 0.10.0
libtpu: 0.0.40
codegen_flags: <defaults>
</compile_context>

<pallas_src>
import functools

import jax
import jax.numpy as jnp
from jax import lax
from jax.experimental import pallas as pl
from jax.experimental.pallas import tpu as pltpu


def _round_up(x, m):
    return (x + m - 1) // m * m


def _vmem_capacity_bytes():
    """Per-core VMEM capacity; conservative 64 MiB (v7x) fallback."""
    try:
        info = pltpu.get_tpu_info()
        cap = getattr(info, "vmem_capacity_bytes", None)
        if cap:
            return int(cap)
    except Exception:
        pass
    return 64 * 1024 * 1024


def _fused_mlp_kernel(x_ref, w_ref, p_ref, o_ref, *scratch, n_valid, eps,
                      weights_resident):
    """One grid step = one (batch_tile, layer) pair.

    x_ref: (TILE_B, D)             padded input activations (read at layer 0 only)
    w_ref: (L, D, D) or (1, D, D)  resident weight stack / streamed per-layer weight
    p_ref: (L, 3, D)               packed [bias; gamma; beta], VMEM-resident
    o_ref: (TILE_B, D) f32         output block (layer-invariant => VMEM-resident)
    scratch: optionally one (TILE_B, D) bf16 carry (bf16-MXU path); otherwise the
             output block itself is the cross-layer carry.
    """
    l = pl.program_id(1)
    n_layers = pl.num_programs(1)

    carry_ref = scratch[0] if scratch else o_ref

    # Layer 0: pull the input block into the carry.
    @pl.when(l == 0)
    def _():
        carry_ref[...] = x_ref[...].astype(carry_ref.dtype)

    h = carry_ref[...]
    w = w_ref[l] if weights_resident else w_ref[0]          # (D, D)

    # Linear on the MXU, f32 accumulation.
    y = jnp.dot(h, w, preferred_element_type=jnp.float32)

    params = p_ref[l]                                       # (3, D) f32
    y = y + params[0:1, :]                                  # bias

    # LayerNorm over the REAL channels only.  Padded columns of y are exactly 0
    # (zero-padded weight columns + bias), so instead of a per-element mask we
    # apply an exact scalar correction to the variance.
    d_pad = y.shape[-1]
    inv_n = 1.0 / float(n_valid)
    mean = jnp.sum(y, axis=-1, keepdims=True) * inv_n
    diff = y - mean
    ssq = jnp.sum(diff * diff, axis=-1, keepdims=True)
    if n_valid != d_pad:                                    # trace-time branch
        ssq = ssq - float(d_pad - n_valid) * (mean * mean)
    var = ssq * inv_n
    y_hat = diff * lax.rsqrt(var + eps)                     # rsqrt -> EUP slot
    out = y_hat * params[1:2, :] + params[2:3, :]           # padded lanes: gamma=beta=0
    out = jnp.maximum(out, 0.0)                             # ReLU (padded lanes stay 0)

    carry_ref[...] = out.astype(carry_ref.dtype)            # carry to the next layer

    if scratch:                                             # carry is NOT the output block
        @pl.when(l == n_layers - 1)
        def _():
            o_ref[...] = out.astype(o_ref.dtype)


def mlp_forward_pallas(x, params, *, eps=1e-5, use_bf16_mxu=True,
                       weights_resident=None):
    """Run the full MLP stack in a single fused pallas_call.

    x:      [B, input_dim] float32
    params: list of (w [in, out], b [out], gamma [out], beta [out])
    returns [B, num_channels] float32
    """
    B, d_in = x.shape
    n_layers = len(params)
    n_channels = params[0][0].shape[1]

    f32 = jnp.float32
    d_pad = _round_up(max(d_in, n_channels), 128)           # lane-dense feature width
    w_dtype = jnp.bfloat16 if use_bf16_mxu else f32
    x_dtype = jnp.bfloat16 if use_bf16_mxu else f32
    w_item = jnp.dtype(w_dtype).itemsize
    x_item = jnp.dtype(x_dtype).itemsize

    # ---- Batch tile plan: balanced tiles (minimal last-tile padding), >= 2 tiles
    # when B > 8 so both v7x TensorCores get work, larger tiles when D is small so
    # the 256-wide MXU stays fed. ----
    b8 = _round_up(B, 8)
    tile_cap = 512 if d_pad <= 256 else 256
    n_tiles = max(pl.cdiv(b8, tile_cap), 2 if b8 > 8 else 1)
    tile_b = _round_up(pl.cdiv(B, n_tiles), 8)
    b_pad = n_tiles * tile_b

    # ---- VMEM budget (per TensorCore) & weight-residency decision. ----
    vmem_budget = _vmem_capacity_bytes() * 3 // 4           # headroom for compiler scratch
    weight_bytes = n_layers * d_pad * d_pad * w_item
    p_bytes = n_layers * 3 * d_pad * 4

    def _plan(tb):
        base = (2 * tb * d_pad * x_item                     # input block (double-buffered)
                + 2 * tb * d_pad * 4                        # output block
                + 2 * p_bytes                               # packed bias/gamma/beta
                + (tb * d_pad * 2 if use_bf16_mxu else 0))  # bf16 carry scratch
        return base, base + 2 * weight_bytes, base + 2 * d_pad * d_pad * w_item

    base, resident_need, stream_need = _plan(tile_b)
    while stream_need > vmem_budget and tile_b > 8:          # shrink tiles for huge D
        tile_b = max(8, _round_up(tile_b // 2, 8))
        n_tiles = pl.cdiv(B, tile_b)
        b_pad = n_tiles * tile_b
        base, resident_need, stream_need = _plan(tile_b)

    if weights_resident is None:
        weights_resident = resident_need <= vmem_budget
    vmem_needed = resident_need if weights_resident else stream_need
    vmem_limit = int(min(max(32 * 1024 * 1024, vmem_needed + (4 << 20)),
                         _vmem_capacity_bytes() * 7 // 8))

    # ---- Stack + zero-pad parameters. ----
    w_stack = jnp.zeros((n_layers, d_pad, d_pad), dtype=f32)
    p_stack = jnp.zeros((n_layers, 3, d_pad), dtype=f32)     # [bias; gamma; beta]
    for li, (w, b, g, be) in enumerate(params):
        din, dout = w.shape
        w_stack = w_stack.at[li, :din, :dout].set(w.astype(f32))
        p_stack = p_stack.at[li, 0, :dout].set(b.astype(f32))
        p_stack = p_stack.at[li, 1, :dout].set(g.astype(f32))
        p_stack = p_stack.at[li, 2, :dout].set(be.astype(f32))
    w_stack = w_stack.astype(w_dtype)

    x_pad = jnp.zeros((b_pad, d_pad), dtype=x_dtype).at[:B, :d_in].set(x.astype(x_dtype))

    # ---- Specs. ----
    if weights_resident:
        # Constant block index => the whole stack is DMA'd once and stays in VMEM.
        w_spec = pl.BlockSpec((n_layers, d_pad, d_pad), lambda i, l: (0, 0, 0))
    else:
        # TODO(synk): for very large D, sweep pipeline_mode=pl.Buffered(3) here.
        w_spec = pl.BlockSpec((1, d_pad, d_pad), lambda i, l: (l, 0, 0))
    p_spec = pl.BlockSpec((n_layers, 3, d_pad), lambda i, l: (0, 0, 0))

    scratch_shapes = [pltpu.VMEM((tile_b, d_pad), jnp.bfloat16)] if use_bf16_mxu else []

    grid = (b_pad // tile_b, n_layers)
    kernel = functools.partial(_fused_mlp_kernel, n_valid=n_channels, eps=eps,
                               weights_resident=weights_resident)

    # Advisory cost estimate reflecting the actual DMA plan.
    w_reads = 1 if weights_resident else (b_pad // tile_b)
    flops = 2 * b_pad * d_pad * d_pad * n_layers
    bytes_accessed = (x_pad.size * x_item + w_stack.size * w_item * w_reads
                      + p_stack.size * 4 + b_pad * d_pad * 4)

    out_pad = pl.pallas_call(
        kernel,
        out_shape=jax.ShapeDtypeStruct((b_pad, d_pad), f32),
        grid_spec=pltpu.PrefetchScalarGridSpec(
            num_scalar_prefetch=0,
            grid=grid,
            in_specs=[
                pl.BlockSpec((tile_b, d_pad), lambda i, l: (i, 0)),
                w_spec,
                p_spec,
            ],
            out_specs=pl.BlockSpec((tile_b, d_pad), lambda i, l: (i, 0)),
            scratch_shapes=scratch_shapes,
        ),
        compiler_params=pltpu.CompilerParams(
            dimension_semantics=("parallel", "arbitrary"),
            vmem_limit_bytes=vmem_limit,
        ),
        cost_estimate=pl.CostEstimate(
            flops=flops,
            transcendentals=b_pad * n_layers,
            bytes_accessed=bytes_accessed,
        ),
    )(x_pad, w_stack, p_stack)

    return out_pad[:B, :n_channels]


def init_mlp_params(key, input_dim, num_channels, num_layers):
    """Deterministic params mirroring the PyTorch __init__:
    Linear weights ~ kaiming-style normal (std = sqrt(2/fan_in)), biases = 0,
    LayerNorm gamma = 1, beta = 0.  Weights stored as [in, out] for x @ W.
    """
    params = []
    dims = [input_dim] + [num_channels] * num_layers
    for li in range(num_layers):
        key, sub = jax.random.split(key)
        fan_in, fan_out = dims[li], dims[li + 1]
        std = (2.0 / fan_in) ** 0.5
        w = std * jax.random.normal(sub, (fan_in, fan_out), dtype=jnp.float32)
        b = jnp.zeros((fan_out,), dtype=jnp.float32)
        gamma = jnp.ones((fan_out,), dtype=jnp.float32)
        beta = jnp.zeros((fan_out,), dtype=jnp.float32)
        params.append((w, b, gamma, beta))
    return params


def mlp_reference(x, params, eps=1e-5):
    """Pure-JAX f32 reference for correctness check."""
    for (w, b, gamma, beta) in params:
        y = x @ w + b
        mean = jnp.mean(y, axis=-1, keepdims=True)
        var = jnp.mean((y - mean) ** 2, axis=-1, keepdims=True)
        y = (y - mean) / jnp.sqrt(var + eps)
        y = y * gamma + beta
        x = jnp.maximum(y, 0.0)
    return x


if __name__ == "__main__":
    key = jax.random.PRNGKey(0)
    k1, k2, kx1, kx2 = jax.random.split(key, 4)

    # Config 1: lane-dense channels (multiple of 128), bf16 MXU path, resident weights.
    B1, DIN1, C1, L1 = 64, 48, 128, 3
    x1 = jax.random.normal(kx1, (B1, DIN1), dtype=jnp.float32)
    p1 = init_mlp_params(k1, DIN1, C1, L1)
    out1 = jax.block_until_ready(mlp_forward_pallas(x1, p1, use_bf16_mxu=True))
    ref1 = mlp_reference(x1, p1)
    assert out1.shape == (B1, C1)
    assert jnp.allclose(out1, ref1, atol=3e-2, rtol=3e-2), "bf16 config mismatch vs reference"

    # Config 2: non-multiple-of-128 channels + ragged batch exercises the padded
    # LayerNorm correction and the f32 output-block-carry path (no scratch).
    B2, DIN2, C2, L2 = 50, 20, 96, 4
    x2 = jax.random.normal(kx2, (B2, DIN2), dtype=jnp.float32)
    p2 = init_mlp_params(k2, DIN2, C2, L2)
    out2 = jax.block_until_ready(mlp_forward_pallas(x2, p2, use_bf16_mxu=False))
    ref2 = mlp_reference(x2, p2)
    assert out2.shape == (B2, C2)
    assert jnp.allclose(out2, ref2, atol=2e-4, rtol=2e-4), "f32 config mismatch vs reference"

    # Config 3: force the streamed-weight fallback path (used when the weight
    # stack would not fit VMEM) to keep it compile-tested.
    out3 = jax.block_until_ready(
        mlp_forward_pallas(x1, p1, use_bf16_mxu=True, weights_resident=False))
    assert jnp.allclose(out3, ref1, atol=3e-2, rtol=3e-2), "streamed-weight path mismatch"

    print("KERNEL_OK")
</pallas_src>

<mosaic_0001>
module attributes {stable_mosaic.version = 11 : i64} {
  func.func @_fused_mlp_kernel(%arg0: i32, %arg1: i32, %arg2: memref<32x128xbf16, #tpu.memory_space<vmem>>, %arg3: memref<3x128x128xbf16, #tpu.memory_space<vmem>>, %arg4: memref<3x3x128xf32, #tpu.memory_space<vmem>>, %arg5: memref<32x128xf32, #tpu.memory_space<vmem>>, %arg6: memref<32x128xbf16, #tpu.memory_space<vmem>>) attributes {dimension_semantics = [#tpu.dimension_semantics<parallel>, #tpu.dimension_semantics<arbitrary>], iteration_bounds = array<i64: 2, 3>, scalar_prefetch = 0 : i64, scratch_operands = 1 : i64, tpu.core_type = #tpu.core_type<tc>, window_params = [{transform_indices = @transform_0, window_bounds = array<i64: 32, 128>}, {pipeline_mode = #tpu.pipeline_mode<synchronous>, transform_indices = @transform_1, window_bounds = array<i64: 3, 128, 128>}, {pipeline_mode = #tpu.pipeline_mode<synchronous>, transform_indices = @transform_2, window_bounds = array<i64: 3, 3, 128>}, {transform_indices = @transform_3, window_bounds = array<i64: 32, 128>}]} {
    %c0_i32 = arith.constant 0 : i32
    %0 = arith.cmpi eq, %arg1, %c0_i32 : i32
    %1 = arith.extui %0 : i1 to i32
    %c0_i32_0 = arith.constant 0 : i32
    %2 = arith.cmpi ne, %1, %c0_i32_0 : i32
    scf.if %2 {
      %c0_15 = arith.constant 0 : index
      %c0_16 = arith.constant 0 : index
      %43 = vector.load %arg2[%c0_15, %c0_16] : memref<32x128xbf16, #tpu.memory_space<vmem>>, vector<32x128xbf16>
      %c0_17 = arith.constant 0 : index
      %c0_18 = arith.constant 0 : index
      %44 = vector.load %arg6[%c0_17, %c0_18] : memref<32x128xbf16, #tpu.memory_space<vmem>>, vector<32x128xbf16>
      tpu.vector_store %arg6[%c0_17, %c0_18], %43 {strides = array<i32>} : memref<32x128xbf16, #tpu.memory_space<vmem>>, vector<32x128xbf16>,
    } else {
    }
    %c0 = arith.constant 0 : index
    %c0_1 = arith.constant 0 : index
    %3 = vector.load %arg6[%c0, %c0_1] : memref<32x128xbf16, #tpu.memory_space<vmem>>, vector<32x128xbf16>
    %4 = arith.index_cast %arg1 : i32 to index
    %c0_2 = arith.constant 0 : index
    %c0_3 = arith.constant 0 : index
    %5 = vector.load %arg3[%4, %c0_2, %c0_3] : memref<3x128x128xbf16, #tpu.memory_space<vmem>>, vector<1x128x128xbf16>
    %6 = vector.shape_cast %5 : vector<1x128x128xbf16> to vector<128x128xbf16>
    %cst = arith.constant dense<0.000000e+00> : vector<32x128xf32>
    %7 = tpu.matmul %3, %6, %cst {dimension_numbers = #tpu.dot_dimension_numbers<[1], [0], [0], [1], [0, 0, 1, 1], [], []>} : vector<32x128xbf16>, vector<128x128xbf16>, vector<32x128xf32> -> vector<32x128xf32>
    %8 = arith.index_cast %arg1 : i32 to index
    %c0_4 = arith.constant 0 : index
    %c0_5 = arith.constant 0 : index
    %9 = vector.load %arg4[%8, %c0_4, %c0_5] : memref<3x3x128xf32, #tpu.memory_space<vmem>>, vector<1x3x128xf32>
    %10 = vector.shape_cast %9 : vector<1x3x128xf32> to vector<3x128xf32>
    %11 = vector.extract_strided_slice %10 {offsets = [0, 0], sizes = [1, 128], strides = [1, 1]} : vector<3x128xf32> to vector<1x128xf32>
    %12 = vector.broadcast %11 : vector<1x128xf32> to vector<32x128xf32>
    %13 = arith.addf %7, %12 : vector<32x128xf32>
    %cst_6 = arith.constant dense<0.000000e+00> : vector<32xf32>
    %14 = vector.multi_reduction <add>, %13, %cst_6 [1] : vector<32x128xf32> to vector<32xf32>
    %15 = vector.shape_cast %14 : vector<32xf32> to vector<32x1xf32>
    %cst_7 = arith.constant 7.812500e-03 : f32
    %16 = vector.broadcast %cst_7 : f32 to vector<32x1xf32>
    %17 = arith.mulf %15, %16 : vector<32x1xf32>
    %18 = vector.broadcast %17 : vector<32x1xf32> to vector<32x128xf32>
    %19 = arith.subf %13, %18 : vector<32x128xf32>
    %20 = arith.mulf %19, %19 : vector<32x128xf32>
    %cst_8 = arith.constant dense<0.000000e+00> : vector<32xf32>
    %21 = vector.multi_reduction <add>, %20, %cst_8 [1] : vector<32x128xf32> to vector<32xf32>
    %22 = vector.shape_cast %21 : vector<32xf32> to vector<32x1xf32>
    %cst_9 = arith.constant 7.812500e-03 : f32
    %23 = vector.broadcast %cst_9 : f32 to vector<32x1xf32>
    %24 = arith.mulf %22, %23 : vector<32x1xf32>
    %cst_10 = arith.constant 9.99999974E-6 : f32
    %25 = vector.broadcast %cst_10 : f32 to vector<32x1xf32>
    %26 = arith.addf %24, %25 : vector<32x1xf32>
    %27 = math.rsqrt %26 : vector<32x1xf32>
    %28 = vector.broadcast %27 : vector<32x1xf32> to vector<32x128xf32>
    %29 = arith.mulf %19, %28 : vector<32x128xf32>
    %30 = vector.extract_strided_slice %10 {offsets = [1, 0], sizes = [1, 128], strides = [1, 1]} : vector<3x128xf32> to vector<1x128xf32>
    %31 = vector.broadcast %30 : vector<1x128xf32> to vector<32x128xf32>
    %32 = arith.mulf %29, %31 : vector<32x128xf32>
    %33 = vector.extract_strided_slice %10 {offsets = [2, 0], sizes = [1, 128], strides = [1, 1]} : vector<3x128xf32> to vector<1x128xf32>
    %34 = vector.broadcast %33 : vector<1x128xf32> to vector<32x128xf32>
    %35 = arith.addf %32, %34 : vector<32x128xf32>
    %cst_11 = arith.constant 0.000000e+00 : f32
    %36 = vector.broadcast %cst_11 : f32 to vector<32x128xf32>
    %37 = arith.maximumf %35, %36 : vector<32x128xf32>
    %38 = arith.truncf %37 : vector<32x128xf32> to vector<32x128xbf16>
    %c0_12 = arith.constant 0 : index
    %c0_13 = arith.constant 0 : index
    %39 = vector.load %arg6[%c0_12, %c0_13] : memref<32x128xbf16, #tpu.memory_space<vmem>>, vector<32x128xbf16>
    tpu.vector_store %arg6[%c0_12, %c0_13], %38 {strides = array<i32>} : memref<32x128xbf16, #tpu.memory_space<vmem>>, vector<32x128xbf16>,
    %c2_i32 = arith.constant 2 : i32
    %40 = arith.cmpi eq, %arg1, %c2_i32 : i32
    %41 = arith.extui %40 : i1 to i32
    %c0_i32_14 = arith.constant 0 : i32
    %42 = arith.cmpi ne, %41, %c0_i32_14 : i32
    scf.if %42 {
      %c0_15 = arith.constant 0 : index
      %c0_16 = arith.constant 0 : index
      %43 = vector.load %arg5[%c0_15, %c0_16] : memref<32x128xf32, #tpu.memory_space<vmem>>, vector<32x128xf32>
      tpu.vector_store %arg5[%c0_15, %c0_16], %37 {strides = array<i32>} : memref<32x128xf32, #tpu.memory_space<vmem>>, vector<32x128xf32>,
    } else {
    }
    return
  }
  func.func @transform_0(%arg0: i32, %arg1: i32) -> (i32, i32) {
    %c0_i32 = arith.constant 0 : i32
    %c0_i32_0 = arith.constant 0 : i32
    return %arg0, %c0_i32 : i32, i32
  }
  func.func @transform_1(%arg0: i32, %arg1: i32) -> (i32, i32, i32) {
    %c0_i32 = arith.constant 0 : i32
    %c0_i32_0 = arith.constant 0 : i32
    %c0_i32_1 = arith.constant 0 : i32
    %c0_i32_2 = arith.constant 0 : i32
    return %c0_i32, %c0_i32_0, %c0_i32_1 : i32, i32, i32
  }
  func.func @transform_2(%arg0: i32, %arg1: i32) -> (i32, i32, i32) {
    %c0_i32 = arith.constant 0 : i32
    %c0_i32_0 = arith.constant 0 : i32
    %c0_i32_1 = arith.constant 0 : i32
    %c0_i32_2 = arith.constant 0 : i32
    return %c0_i32, %c0_i32_0, %c0_i32_1 : i32, i32, i32
  }
  func.func @transform_3(%arg0: i32, %arg1: i32) -> (i32, i32) {
    %c0_i32 = arith.constant 0 : i32
    %c0_i32_0 = arith.constant 0 : i32
    return %arg0, %c0_i32 : i32, i32
  }
}

</mosaic_0001>

<bundles_post_ra>
// kernel: tpu_custom_call.1
= control target key start
LH: loop header
LB: loop body
LE: loop exit
PB: predicated region body
PF: predicated region fallthrough
CT: control target
= control target key end

     0   :  { %s1245_s0 = inlined_call_operand.hbm [shape: bf16[64,128], index: 0, kind: input, shape index: {}]   ;;  %s1246_s1 = inlined_call_operand.hbm [shape: bf16[3,128,128], index: 1, kind: input, shape index: {}]   ;;  %s1247_s2 = inlined_call_operand.hbm [shape: f32[3,3,128], index: 2, kind: input, shape index: {}]   ;;  %s1248_s3 = inlined_call_operand.hbm [shape: f32[64,128], index: 3, kind: output, shape index: {}]  }
   0x1   :  { %1252 = sst [smem:[#allocation14_spill]] %s1246_s1 }
   0x2   :  { %1253 = sst [smem:[#allocation15_spill]] %s1247_s2 }
   0x3   :  { %8 = vsyncpa [#allocation4], 0 }
   0x4   :  { %10 = vsyncpa [#allocation4 + $0x1], 0 }
   0x5   :  { %11 = vsyncpa [#allocation7], 0 }
   0x6   :  { %12 = vsyncpa [#allocation5], 0 }
   0x7   :  { %14 = vsyncpa [#allocation5 + $0x1], 0  ;;  %s1014_s12 = smov 0   ;;  %s1016_s13 = smov 0  }
   0x8   :  { %s1018_s14 = smov 0   ;;  %s1020_s15 = smov 0  }
   0x9   :  { %s1022_s16 = smov 0   ;;  %s1024_s17 = smov 0  }
   0xa   :  { %s1026_s18 = smov 0   ;;  %s1028_s19 = smov 0  }
   0xb LB: > { %s597_s20 = sadd.s32 4294967295, %s984_s19   ;;  %s598_s21 = sadd.s32 4294967294, %s984_s19   ;;  %s984_s19 = sphi %s1028_s19, %s20_s19   ;;  %s980_s18 = sphi %s1026_s18, %s1276_s18   ;;  %s976_s17 = sphi %s1024_s17, %s1275_s17   ;;  %s972_s16 = sphi %s1022_s16, %s1274_s16   ;;  %s968_s15 = sphi %s1020_s15, %s1273_s15   ;;  %s964_s14 = sphi %s1018_s14, %s1272_s14   ;;  %s960_s13 = sphi %s1016_s13, %s1271_s13   ;;  %s956_s12 = sphi %s1014_s12, %s1270_s12  }
   0xc   : > { %p52_p0 = scmp.ne.s32.totalorder %s960_s13, %s956_s12  ;;  %p1058_p1 = scmp.eq.s32.totalorder %s597_s20, 0 }
   0xd   : > { %p1062_p2 = scmp.eq.s32.totalorder %s597_s20, 5  ;;  %p124_p3 = scmp.eq.s32.totalorder %s598_s21, 5 }
   0xe   : > { %p1068_p4 = por %p1058_p1, %p52_p0  ;;  %p599_p5 = scmp.ge.s32.totalorder %s984_s19, 1 }
   0xf   : > { %p1073_p6 = por %p124_p3, %p52_p0  ;;  %p131_p7 = scmp.lt.s32.totalorder %s984_s19, 7 }
  0x10   : > { %s986_s27 = smov [#allocation6]   ;;  %s987_s30 = smov [#allocation8]  }
  0x11   : > { %s1257_s25 = scalar_select %p1073_p6, 1, 0 }
  0x12   : > { %p1078_p8 = pnand %p599_p5, %p131_p7  ;;  %s143_s28 = sshll.u32 %s986_s27, 4  ;;  %s144_s28 = int_to_ptr.vmem [resolvable:$true] %s143_s28 }
  0x13   : > { %s156_s4 = sshll.u32 %s987_s30, 4  ;;  %s815_s5 = scalar_lea.vmem %s144_s28, 3072  ;;  %s157_s4 = int_to_ptr.vmem [resolvable:$true] %s156_s4 }
  0x14   : > { %p695_p9 = pneg %p1078_p8  ;;  %p816_p12 = scmp.ne.s32.totalorder %s144_s28, %s815_s5 }
  0x15   : > { %p823_p3 = scmp.lt.s32.totalorder %s144_s28, %s144_s28  ;;  %p824_p5 = scmp.lt.s32.totalorder %s815_s5, %s815_s5 }
  0x16   : > { %p1086_p10 = pnand %p695_p9, %p1058_p1 }
  0x17   : > { %p825_p7 = por %p824_p5, %p823_p3 }
  0x18   : > { %p806_p11 = pneg %p1086_p10 }
  0x1a   : > { %p818_p13 = pnand %p816_p12, %p806_p11 }
  0x1c   : > { %p819_p0 = pneg %p818_p13 }
  0x1e   : > { %p826_p9 = pnand %p825_p7, %p819_p0 }
  0x20   : > { %829 = shalt.err (!%p826_p9)
}
  0x21   : > { %s1249_s6 = smov 64   ;;  %s1250_s7 = smov 4  }
  0x22   : > { %s1260_s1 = sld [smem:[#allocation14_spill]]  ;;  %s841_s10 = scalar_lea.vmem %s157_s4, 192 }
  0x23   : > { %p842_p12 = scmp.ne.s32.totalorder %s157_s4, %s841_s10  ;;  %p849_p0 = scmp.lt.s32.totalorder %s157_s4, %s157_s4 }
  0x24   : > { %p850_p5 = scmp.lt.s32.totalorder %s841_s10, %s841_s10 }
  0x25   : > { %p844_p13 = pnand %p842_p12, %p806_p11 }
  0x26   : > { %p851_p7 = por %p850_p5, %p849_p0 }
  0x27   : > { %p845_p3 = pneg %p844_p13 }
  0x28   : > { %698 = dma.hbm_to_vmem [thread:$0]  (!%p1086_p10), %s1260_s1, 3072, %s144_s28, [#allocation7], %s1249_s6, %s1249_s6, %s1250_s7  }
  0x29   : > { %p852_p9 = pnand %p851_p7, %p845_p3 }
  0x2b   : > { %855 = shalt.err (!%p852_p9)
}
  0x2c   : > { %s1261_s2 = sld [smem:[#allocation15_spill]]  ;;  %s29_s21 = sadd.s32 1, %s976_s17 }
  0x2d   : > { %s32_s27 = sadd.s32 1, %s980_s18  ;;  %p30_p11 = scmp.ge.s32.totalorder %s29_s21, 3 }
  0x2e   : > { %s39_s28 = sadd.s32 1, %s964_s14  ;;  %p46_p12 = scmp.ne.s32.totalorder %s964_s14, %s960_s13 }
  0x2f   : > { %p47_p13 = scmp.eq.s32.totalorder %s984_s19, 0  ;;  %s1278_s21 = smov (%p30_p11, %s29_s21), 0 }
  0x30   : > { %s1280_s27 = smov (!%p30_p11, %s32_s27), %s980_s18  ;;  %p1129_p0 = por %p1062_p2, %p46_p12 }
  0x31   : > { %p1123_p3 = por %p47_p13, %p46_p12  ;;  %p712_p5 = scmp.lt.s32.totalorder %s984_s19, 6 }
  0x32   : > { %701 = dma.hbm_to_vmem [thread:$0]  (!%p1086_p10), %s1261_s2, 192, %s157_s4, [#allocation7], %s1249_s6, %s1249_s6, %s1250_s7  }
  0x33   : > { %p34_p10 = scmp.ge.s32.totalorder %s1280_s27, 2  ;;  %s170_s4 = sand.u32 1, %s964_s14  }
  0x34   : > { %s635_s5 = sshll.u32 %s980_s18, 8  ;;  %s603_s8 = sshll.u32 %s170_s4, 4 }
  0x35   : > { %s1282_s27 = smov (%p34_p10, %s1280_s27), 0  ;;  %s180_s20 = scalar_lea.hbm %s1245_s0, %s635_s5 }
  0x36   : > { %1264 = sst [smem:[#allocation13_spill]] %s1282_s27  ;;  %s36_s9 = ssub.s32 %s980_s18, %s1282_s27 }
  0x37   : > { %p37_p7 = scmp.eq.s32.totalorder %s36_s9, 0  ;;  %s174_s23 = scalar_lea.vmem [#allocation3], %s603_s8 }
  0x38   : > { %s181_s6 = sshll.u32 %s174_s23, 4  ;;  %p1145_p2 = pnand %p712_p5, %p1123_p3  ;;  %s182_s6 = int_to_ptr.vmem [resolvable:$true] %s181_s6 }
  0x39   : > { %s1150_s1 = scalar_select %p37_p7, %s964_s14, %s39_s28  }
  0x3a   : > { %s171_s2 = scalar_lea.sflag [#allocation4], %s170_s4  ;;  %p858_p9 = pneg %p1145_p2 }
  0x3b   : > { %s869_s27 = scalar_lea.vmem %s182_s6, 256  ;;  %s990_s9 = smov [#allocation3]  }
  0x3c   : > { %p870_p11 = scmp.ne.s32.totalorder %s182_s6, %s869_s27  ;;  %s874_s5 = sshll.u32 %s990_s9, 4  ;;  %s875_s5 = int_to_ptr.vmem [resolvable:$false] %s874_s5 }
  0x3d   : > { %s876_s8 = scalar_lea.vmem %s875_s5, 512  ;;  %p877_p10 = scmp.lt.s32.totalorder %s182_s6, %s875_s5 }
  0x3e   : > { %p872_p12 = pnand %p870_p11, %p858_p9  ;;  %p878_p3 = scmp.lt.s32.totalorder %s876_s8, %s869_s27 }
  0x40   : > { %p873_p13 = pneg %p872_p12  ;;  %p879_p5 = por %p878_p3, %p877_p10 }
  0x42   : > { %p880_p6 = pnand %p879_p5, %p873_p13 }
  0x44   : > { %883 = shalt.err (!%p880_p6)
}
  0x45   : > { %s1266_s28 = smov 4   ;;  %s1267_s29 = smov 64  }
  0x46   : > { %705 = dma.hbm_to_vmem [thread:$0]  (!%p1145_p2), %s180_s20, 256, %s182_s6, %s171_s2, %s1267_s29, %s1267_s29, %s1266_s28  }
  0x47   : > { %193 = sbr.rel (%p1078_p8) target bundleno = 665 (0x299), region = 32  ;;  %s1162_s4 = sand.u32 (!%p1078_p8), 1, %s960_s13  }
  0x48   : > { %s607_s10 = sshll.u32 (!%p1078_p8), %s1162_s4, 4  ;;  %s196_s27 = scalar_lea.sflag (!%p1078_p8), [#allocation4], %s1162_s4 }
  0x49   : > { %s199_s11 = scalar_lea.vmem (!%p1078_p8), [#allocation3], %s607_s10 }
  0x4c   : > { %943 = dma.done.wait (%p1068_p4), %s196_s27, 256  }
  0x4d   : > { %945 = vsyncadd (%p1068_p4), %s196_s27, 4294967040 }
  0x4e   : > { %947 = dma.done.wait (%p1058_p1), [#allocation7], 3264  }
  0x4f   : > { %949 = vsyncadd (%p1058_p1), [#allocation7], 4294964032  ;;  %s610_s2 = sshll.u32 %s1162_s4, 5  ;;  %p611_p6 = scmp.ne.s32.totalorder %s968_s15, 0 }
  0x50   : > { %s1175_s26 = scalar_lea.vmem [#allocation9], %s610_s2 }
  0x51   : > { %236 = sbr.rel (%p611_p6) target bundleno = 88 (0x58), region = 48 }
  0x56   : > { %v237_v0 = vld [vmem:[%s199_s11] sm:$0xff]   ;;  %v239_v1 = vld [vmem:[%s199_s11 + $0x8] sm:$0xff]  }
  0x57   : > { %241 = vst [vmem:[#allocation2] sm:$0xff] %v237_v0   ;;  %243 = vst [vmem:[#allocation2 + $0x8] sm:$0xff] %v239_v1  }
  0x58 PF: > { %s636_s24 = sshll.u32 %s968_s15, 6  ;;  %v271_v12 = vlaneseq  ;;  %s614_s22 = sshll.u32 %s968_s15, 2 }
  0x59   : > { %s251_s6 = scalar_lea.vmem [#allocation6], %s636_s24  ;;  %s269_s7 = scalar_lea.vmem [#allocation8], %s614_s22 }
  0x5a   : > { %v786_v3 = vld [vmem:[%s251_s6 + $0x38] sm:$0xff]   ;;  %v787_v4 = vld [vmem:[%s251_s6 + $0x30] sm:$0xff]   ;;  %v788_v5 = vld [vmem:[%s251_s6 + $0x28] sm:$0xff]   ;;  %v272_v13 = vshrl.u32 %v271_v12, 7  ;;  %p629_p1 = scmp.ne.s32.totalorder %s968_s15, 2 }
  0x5b   : > { %663 = vmatprep.subr.bf16.mxu0 %v786_v3  ;;  %v789_v6 = vld [vmem:[%s251_s6 + $0x20] sm:$0xff]   ;;  %v790_v7 = vld [vmem:[%s251_s6 + $0x18] sm:$0xff]   ;;  %v791_v8 = vld [vmem:[%s251_s6 + $0x10] sm:$0xff]  }
  0x5c   : > { %664 = vmatpush3.bf16.msra.mxu0 %v786_v3  ;;  %v792_v9 = vld [vmem:[%s251_s6 + $0x8] sm:$0xff]   ;;  %v793_v10 = vld [vmem:[%s251_s6] sm:$0xff]   ;;  %v273_v14 = vsub.s32 0, %v272_v13  ;;  %v430_v53 = vsub.s32 1, %v272_v13  ;;  %v438_v55 = vsub.s32 2, %v272_v13 }
  0x5d   : > { %665 = vmatprep.subr.bf16.mxu0 %v787_v4  ;;  %v270_v15 = vld [vmem:[%s269_s7] sm:$0x7] }
  0x5e   : > { %v794_v2 = vld [vmem:[#allocation2] sm:$0xff]   ;;  %v795_v11 = vld [vmem:[#allocation2 + $0x8] sm:$0xff]   ;;  %v274_v16 = vrot.slane %v270_v15, %v273_v14  ;;  %v431_v54 = vrot.slane %v270_v15, %v430_v53  ;;  %v439_v58 = vrot.slane %v270_v15, %v438_v55 }
  0x5f   : > { %679 = vmatprep.mubr.bf16.mxu0 %v794_v2 }
  0x60   : > { %666 = vmatpush3.bf16.msra.mxu0 %v787_v4 }
  0x61   : > { %667 = vmatprep.subr.bf16.mxu0 %v788_v5 }
  0x64   : > { %668 = vmatpush3.bf16.msra.mxu0 %v788_v5 }
  0x65   : > { %669 = vmatprep.subr.bf16.mxu0 %v789_v6 }
  0x68   : > { %670 = vmatpush3.bf16.msra.mxu0 %v789_v6 }
  0x69   : > { %671 = vmatprep.subr.bf16.mxu0 %v790_v7 }
  0x6c   : > { %672 = vmatpush3.bf16.msra.mxu0 %v790_v7 }
  0x6d   : > { %673 = vmatprep.subr.bf16.mxu0 %v791_v8 }
  0x70   : > { %674 = vmatpush3.bf16.msra.mxu0 %v791_v8 }
  0x71   : > { %675 = vmatprep.subr.bf16.mxu0 %v792_v9 }
  0x74   : > { %676 = vmatpush3.bf16.msra.mxu0 %v792_v9 }
  0x75   : > { %677 = vmatprep.subr.bf16.mxu0 %v793_v10 }
  0x78   : > { %678 = vmatpush3.bf16.msra.mxu0 %v793_v10 }
  0x7b   : > { %680 = vmatmul.mubr.bf16.vlgmr.msra.gmra.mxu0 %v795_v11 }
 0x13b   : > { %v681_v17 = vpop.f32.mrf.mxu0 }
 0x13c   : > { %v378_v18 = vadd.f32 %v681_v17, %v274_v16 }
 0x13d   : > { %v369_v19 = vpop.f32.mrf.mxu0 }
 0x13e   : > { %v370_v20 = vadd.f32 %v369_v19, %v274_v16  ;;  %388 = vadd.xlane.f32.xlu1 %v378_v18 }
 0x13f   : > { %v682_v21 = vpop.f32.mrf.mxu0 }
 0x140   : > { %v381_v22 = vadd.f32 %v682_v21, %v274_v16  ;;  %384 = vadd.xlane.f32.xlu0 %v370_v20 }
 0x141   : > { %v372_v23 = vpop.f32.mrf.mxu0 }
 0x142   : > { %v373_v24 = vadd.f32 %v372_v23, %v274_v16  ;;  %390 = vadd.xlane.f32.xlu1 %v381_v22 }
 0x144   : > { %386 = vadd.xlane.f32.xlu0 %v373_v24 }
 0x1c7   : > { %v389_v25 = vpop.xlane.xlu1 %388 }
 0x1c8   : > { %v394_v27 = vmul.f32 0.0078125, %v389_v25 }
 0x1c9   : > { %v385_v26 = vpop.xlane.xlu0 %384 }
 0x1ca   : > { %v392_v28 = vmul.f32 0.0078125, %v385_v26  ;;  %v398_v32 = vsub.f32 %v378_v18, %v394_v27 }
 0x1cb   : > { %v391_v29 = vpop.xlane.xlu1 %390 }
 0x1cc   : > { %v396_v30 = vsub.f32 %v370_v20, %v392_v28  ;;  %v395_v33 = vmul.f32 0.0078125, %v391_v29  ;;  %v402_v38 = vmul.f32 %v398_v32, %v398_v32 }
 0x1cd   : > { %v387_v31 = vpop.xlane.xlu0 %386 }
 0x1ce   : > { %v393_v34 = vmul.f32 0.0078125, %v387_v31  ;;  %v400_v35 = vmul.f32 %v396_v30, %v396_v30  ;;  %v399_v37 = vsub.f32 %v381_v22, %v395_v33 }
 0x1d0   : > { %v397_v36 = vsub.f32 %v373_v24, %v393_v34  ;;  %404 = vadd.xlane.f32.xlu0 %v400_v35  ;;  %v403_v40 = vmul.f32 %v399_v37, %v399_v37 }
 0x1d2   : > { %v401_v39 = vmul.f32 %v397_v36, %v397_v36 }
 0x1d4   : > { %408 = vadd.xlane.f32.xlu0 %v402_v38  ;;  %406 = vadd.xlane.f32.xlu1 %v401_v39 }
 0x1d8   : > { %410 = vadd.xlane.f32.xlu1 %v403_v40 }
 0x259   : > { %v405_v41 = vpop.xlane.xlu0 %404 }
 0x25a   : > { %v412_v42 = vmul.f32 0.0078125, %v405_v41 }
 0x25c   : > { %v416_v43 = vadd.f32 1e-05, %v412_v42 }
 0x25d   : > { %v407_v44 = vpop.xlane.xlu1 %406  ;;  %v409_v45 = vpop.xlane.xlu0 %408 }
 0x25e   : > { %796 = vrsqrt.f32 %v416_v43  ;;  %v413_v46 = vmul.f32 0.0078125, %v407_v44  ;;  %v414_v47 = vmul.f32 0.0078125, %v409_v45 }
 0x260   : > { %v417_v48 = vadd.f32 1e-05, %v413_v46  ;;  %v418_v49 = vadd.f32 1e-05, %v414_v47 }
 0x261   : > { %v411_v50 = vpop.xlane.xlu1 %410 }
 0x262   : > { %798 = vrsqrt.f32 %v417_v48  ;;  %v415_v51 = vmul.f32 0.0078125, %v411_v50 }
 0x263   : > { %800 = vrsqrt.f32 %v418_v49 }
 0x264   : > { %v419_v52 = vadd.f32 1e-05, %v415_v51 }
 0x266   : > { %802 = vrsqrt.f32 %v419_v52 }
 0x26b   : > { %v797_v56 = vpop.eup %796 }
 0x26c   : > { %v424_v57 = vmul.f32 %v797_v56, %v396_v30 }
 0x26e   : > { %v432_v59 = vmul.f32 %v431_v54, %v424_v57 }
 0x26f   : > { %v799_v60 = vpop.eup %798 }
 0x270   : > { %v801_v61 = vpop.eup %800  ;;  %v425_v62 = vmul.f32 %v799_v60, %v397_v36  ;;  %v440_v0 = vadd.f32 %v439_v58, %v432_v59 }
 0x271   : > { %v426_v63 = vmul.f32 %v801_v61, %v398_v32 }
 0x272   : > { %v433_v1 = vmul.f32 %v431_v54, %v425_v62  ;;  %v444_v6 = vmax.f32 %v440_v0, 0.0 }
 0x273   : > { %v803_v2 = vpop.eup %802  ;;  %v434_v3 = vmul.f32 %v431_v54, %v426_v63 }
 0x274   : > { %v441_v4 = vadd.f32 %v439_v58, %v433_v1  ;;  %v427_v5 = vmul.f32 %v803_v2, %v399_v37 }
 0x275   : > { %v442_v8 = vadd.f32 %v439_v58, %v434_v3 }
 0x276   : > { %v445_v7 = vmax.f32 %v441_v4, 0.0  ;;  %v435_v9 = vmul.f32 %v431_v54, %v427_v5 }
 0x277   : > { %v446_v12 = vmax.f32 %v442_v8, 0.0 }
 0x278   : > { %v645_v10 = vpack.c.bf16 %v445_v7, %v444_v6  ;;  %v443_v11 = vadd.f32 %v439_v58, %v435_v9 }
 0x27a   : > { %646 = vst [vmem:[#allocation2] sm:$0xff] %v645_v10   ;;  %v447_v13 = vmax.f32 %v443_v11, 0.0  ;;  %471 = sbr.rel (%p629_p1) target bundleno = 641 (0x281), region = 52 }
 0x27c   : > { %v650_v14 = vpack.c.bf16 %v447_v13, %v446_v12 }
 0x27e   : > { %652 = vst [vmem:[#allocation2 + $0x8] sm:$0xff] %v650_v14  }
 0x27f   : > { %472 = vst [vmem:[%s1175_s26] sm:$0xff] %v444_v6  ;;  %473 = vst [vmem:[%s1175_s26 + $0x8] sm:$0xff] %v445_v7 }
 0x280   : > { %474 = vst [vmem:[%s1175_s26 + $0x10] sm:$0xff] %v446_v12  ;;  %475 = vst [vmem:[%s1175_s26 + $0x18] sm:$0xff] %v447_v13 }
 0x281 PF: > { %s641_s20 = sshll.u32 %s972_s16, 9  ;;  %s490_s15 = sshll.u32 %s1175_s26, 4  ;;  %s1192_s15 = int_to_ptr.vmem [resolvable:$true] %s490_s15 }
 0x282   : > { %s1189_s5 = scalar_lea.hbm %s1248_s3, %s641_s20  ;;  %s477_s8 = scalar_lea.sflag [#allocation5], %s1162_s4 }
 0x283   : > { %s884_s28 = scalar_lea.vmem %s1192_s15, 512  ;;  %s991_s29 = smov [#allocation9]  }
 0x284   : > { %p885_p4 = scmp.ne.s32.totalorder %s1192_s15, %s884_s28  ;;  %s888_s10 = sshll.u32 %s991_s29, 4  ;;  %s889_s10 = int_to_ptr.vmem [resolvable:$false] %s888_s10 }
 0x285   : > { %s890_s16 = scalar_lea.vmem %s889_s10, 1024  ;;  %p891_p2 = scmp.lt.s32.totalorder %s1192_s15, %s889_s10 }
 0x286   : > { %p886_p8 = pnand %p885_p4, %p1129_p0  ;;  %p892_p9 = scmp.lt.s32.totalorder %s890_s16, %s884_s28 }
 0x288   : > { %p887_p7 = pneg %p886_p8  ;;  %p893_p11 = por %p892_p9, %p891_p2 }
 0x28a   : > { %p894_p12 = pnand %p893_p11, %p887_p7 }
 0x28c   : > { %897 = shalt.err (!%p894_p12)
}
 0x28d   : > { %s898_s27 = scalar_lea.hbm %s1189_s5, 512  ;;  %s902_s26 = scalar_lea.hbm %s1248_s3, 1024 }
 0x28e   : > { %p899_p13 = scmp.ne.s32.totalorder %s1189_s5, %s898_s27  ;;  %p903_p5 = scmp.lt.s32.totalorder %s1189_s5, %s1248_s3 }
 0x28f   : > { %p904_p6 = scmp.lt.s32.totalorder %s902_s26, %s898_s27 }
 0x290   : > { %p900_p10 = pnand %p899_p13, %p1129_p0 }
 0x291   : > { %p905_p1 = por %p904_p6, %p903_p5 }
 0x292   : > { %p901_p3 = pneg %p900_p10 }
 0x294   : > { %p906_p4 = pnand %p905_p1, %p901_p3 }
 0x296   : > { %909 = shalt.err (!%p906_p4)
}
 0x297   : > { %s992_s22 = smov 128   ;;  %s993_s7 = smov 8  }
 0x298   : > { %693 = dma.vmem_to_hbm [thread:$0]  (%p1129_p0), %s1192_s15, 512, %s1189_s5, %s477_s8, %s992_s22, %s992_s22, %s993_s7  }
 0x299 PF: > { %p715_p8 = scmp.ge.s32.totalorder %s984_s19, 2  ;;  %s505_s20 = sand.u32 1, %s956_s12  }
 0x29a   : > { %p1268_p7 = scmp.ne.s32.totalorder %s1257_s25, 0  ;;  %s506_s23 = scalar_lea.sflag [#allocation5], %s505_s20 }
 0x29c   : > { %p707_p2 = pnand %p715_p8, %p1268_p7 }
 0x29e   : > { %p708_p9 = pneg %p707_p2 }
 0x2a0   : > { %951 = dma.done.wait (%p708_p9), %s506_s23, 512  }
 0x2a1   : > { %953 = vsyncadd (%p708_p9), %s506_s23, 4294966784  ;;  %s20_s19 = sadd.s32 1, %s984_s19   ;;  %s1269_s30 = sld [smem:[#allocation13_spill]] }
 0x2a2   : > { %p17_p11 = scmp.ge.s32.totalorder %s20_s19, 8   ;;  %s1270_s12 = smov %s960_s13 }
 0x2a3   : > { %s1271_s13 = smov %s964_s14  ;;  %s1272_s14 = smov %s1150_s1 }
 0x2a4   : > { %s1273_s15 = smov %s976_s17  ;;  %s1274_s16 = smov %s980_s18 }
 0x2a5   : > { %s1275_s17 = smov %s1278_s21  ;;  %19 = sbr.rel (!%p17_p11) target bundleno = 11 (0xb), region = 95 }
 0x2a7   : > { %s1276_s18 = smov %s1269_s30 }
 0x2aa   :  { %511 = vsyncpa [#allocation4], 1 }
 0x2ab   :  { %513 = vsyncpa [#allocation4 + $0x1], 1 }
 0x2ac   :  { %514 = vsyncpa [#allocation7], 1 }
 0x2ad   :  { %515 = vsyncpa [#allocation5], 1 }
 0x2ae   :  { %517 = vsyncpa [#allocation5 + $0x1], 1 }

</bundles_post_ra>
